<compile_context>
chip_gen: v7x
topology: tpu7x:2x2x1
jax: 0.10.0
libtpu: 0.0.40
codegen_flags: <defaults>
</compile_context>

<pallas_src>
import functools

import jax
import jax.numpy as jnp
from jax.experimental import pallas as pl
from jax.experimental.pallas import tpu as pltpu


def _round_up(x, m):
    return (x + m - 1) // m * m


def _pad_to(x, axis, target):
    pad = target - x.shape[axis]
    if pad == 0:
        return x
    widths = [(0, 0)] * x.ndim
    widths[axis] = (0, pad)
    return jnp.pad(x, widths)


# ---------------- Layer 1: h = tanh(emb @ W1 + b1)  (tiny; one grid step) -----
def _layer1_kernel(emb_ref, w1_ref, b1_ref, h_ref):
    h = jnp.tanh(
        jnp.dot(emb_ref[...], w1_ref[...], preferred_element_type=jnp.float32)
        + b1_ref[...]
    )
    h_ref[...] = h.astype(h_ref.dtype)


# ---------------- Layer 2: pkv = h @ W2 + b2  (W2 streamed tile-by-tile) ------
def _layer2_kernel(h_ref, w2_ref, b2_ref, out_ref):
    # h_ref : (S, hid_p)    bf16, grid-invariant
    # w2_ref: (hid_p, tn)   bf16, streamed (lane-dense tile)
    # b2_ref: (1, tn)       f32,  streamed
    # out   : (S, tn)       f32
    out_ref[...] = (
        jnp.dot(h_ref[...], w2_ref[...], preferred_element_type=jnp.float32)
        + b2_ref[...]
    ).astype(out_ref.dtype)
    # TODO(synk): dropout with rate 0.0 (module default) is the identity; a
    # nonzero training-time rate would need a pltpu.prng_seed/prng_random_bits mask.


def prepare_params(params, *, n_layer, n_embd,
                   out_tile_cap=8192, w2_vmem_budget=24 << 20):
    """One-time prep: pad contraction/output dims to lane-dense multiples and
    cast the matmul operands to bf16 (so the per-forward HBM stream is minimal).
    Padding is mathematically exact: tanh(0)=0 and padded W2 rows/cols are 0."""
    emb, w1, b1, w2, b2 = (params["prefix_wte"], params["w1"], params["b1"],
                           params["w2"], params["b2"])
    S, input_dim = emb.shape
    hidden_dim = w1.shape[1]
    out_dim = n_layer * 2 * n_embd
    assert w2.shape == (hidden_dim, out_dim)

    in_p = _round_up(input_dim, 128)
    hid_p = _round_up(hidden_dim, 128)

    # Pick the largest lane-dense out tile that fits a double-buffered VMEM budget.
    per_col_bytes = 2 * (hid_p * 2 + S * 4 + 4)      # w2 + out + b2, double-buffered
    max_cols = max(128, (w2_vmem_budget // per_col_bytes) // 128 * 128)
    tn = int(min(_round_up(out_dim, 128), out_tile_cap, max_cols))
    out_p = _round_up(out_dim, tn)

    prepped = {
        "emb": _pad_to(emb, 1, in_p).astype(jnp.bfloat16),                       # (S, in_p)
        "w1": _pad_to(_pad_to(w1, 0, in_p), 1, hid_p).astype(jnp.bfloat16),      # (in_p, hid_p)
        "b1": _pad_to(b1, 0, hid_p)[None, :].astype(jnp.float32),                # (1, hid_p)
        "w2": _pad_to(_pad_to(w2, 0, hid_p), 1, out_p).astype(jnp.bfloat16),     # (hid_p, out_p)
        "b2": _pad_to(b2, 0, out_p)[None, :].astype(jnp.float32),                # (1, out_p)
    }
    meta = dict(S=S, in_p=in_p, hid_p=hid_p, out_dim=out_dim, out_p=out_p, tn=tn)
    return prepped, meta


def prefix_encoder_forward(prepped, meta, batch_size, *, n_layer, n_head, n_embd):
    """Returns a tuple of n_layer arrays, each (2, B, n_head, S, head_dim)."""
    S, in_p, hid_p = meta["S"], meta["in_p"], meta["hid_p"]
    out_dim, out_p, tn = meta["out_dim"], meta["out_p"], meta["tn"]
    head_dim = n_embd // n_head

    # ---- Layer 1: tiny, one grid step, full blocks (hoisted out of the big kernel).
    h = pl.pallas_call(
        _layer1_kernel,
        out_shape=jax.ShapeDtypeStruct((S, hid_p), jnp.bfloat16),
        grid_spec=pltpu.PrefetchScalarGridSpec(
            num_scalar_prefetch=0,
            grid=(1,),
            in_specs=[
                pl.BlockSpec((S, in_p), lambda i: (0, 0)),
                pl.BlockSpec((in_p, hid_p), lambda i: (0, 0)),
                pl.BlockSpec((1, hid_p), lambda i: (0, 0)),
            ],
            out_specs=pl.BlockSpec((S, hid_p), lambda i: (0, 0)),
        ),
        compiler_params=pltpu.CompilerParams(
            dimension_semantics=("arbitrary",)),
    )(prepped["emb"], prepped["w1"], prepped["b1"])

    # ---- Layer 2: stream W2 in lane-dense tiles; grid axis is parallel
    #      (shards across both TensorCores on v7x; no-op on v5e/v6e).
    n_tiles = out_p // tn
    tile_bytes = 2 * (S * hid_p * 2) + 2 * (hid_p * tn * 2) \
        + 2 * (tn * 4) + 2 * (S * tn * 4)                      # double-buffered blocks
    vmem_limit = int(min(max(2 * tile_bytes + (8 << 20), 16 << 20), 32 << 20))

    pkv = pl.pallas_call(
        _layer2_kernel,
        out_shape=jax.ShapeDtypeStruct((S, out_p), jnp.float32),
        grid_spec=pltpu.PrefetchScalarGridSpec(
            num_scalar_prefetch=0,
            grid=(n_tiles,),
            in_specs=[
                pl.BlockSpec((S, hid_p), lambda j: (0, 0)),    # h   (grid-invariant)
                pl.BlockSpec((hid_p, tn), lambda j: (0, j)),   # w2  (streamed)
                pl.BlockSpec((1, tn), lambda j: (0, j)),       # b2  (streamed)
            ],
            out_specs=pl.BlockSpec((S, tn), lambda j: (0, j)),
        ),
        compiler_params=pltpu.CompilerParams(
            dimension_semantics=("parallel",),
            vmem_limit_bytes=vmem_limit,
        ),
    )(h, prepped["w2"], prepped["b2"])

    # ---- Layout glue (pure JAX): drop out_dim padding, transpose the single
    #      un-replicated result, then broadcast over batch.
    pkv = pkv[:, :out_dim]
    pkv = pkv.reshape(S, n_layer * 2, n_head, head_dim)
    pkv = jnp.transpose(pkv, (1, 2, 0, 3))                     # (L*2, H, S, hd)
    # TODO(synk): consumers that accept a batch-1 prefix could skip this B-way
    # replication (for realistic B it dominates the HBM writeback).
    pkv = jnp.broadcast_to(pkv[:, None],
                           (n_layer * 2, batch_size, n_head, S, head_dim))
    return tuple(pkv[2 * i:2 * i + 2] for i in range(n_layer))


def init_params(key, *, prefix_seq_len, input_dim, hidden_dim, n_layer, n_embd):
    k0, k1, k2, k3, k4 = jax.random.split(key, 5)
    out_dim = n_layer * 2 * n_embd
    return {
        # nn.Embedding(prefix_seq_len, input_dim) weight
        "prefix_wte": jax.random.normal(k0, (prefix_seq_len, input_dim),
                                        jnp.float32) * 0.02,
        # nn.Linear(input_dim, hidden_dim)
        "w1": jax.random.normal(k1, (input_dim, hidden_dim), jnp.float32) * 0.02,
        "b1": jax.random.normal(k2, (hidden_dim,), jnp.float32) * 0.02,
        # nn.Linear(hidden_dim, n_layer * 2 * n_embd)
        "w2": jax.random.normal(k3, (hidden_dim, out_dim), jnp.float32) * 0.02,
        "b2": jax.random.normal(k4, (out_dim,), jnp.float32) * 0.02,
    }


if __name__ == "__main__":
    # Small config consistent with the module.
    prefix_seq_len = 8
    input_dim = 32
    hidden_dim = 32
    n_layer = 2
    n_head = 4
    n_embd = 32            # head_dim = 8, out_dim = 128
    batch_size = 2

    key = jax.random.PRNGKey(0)
    params = init_params(key, prefix_seq_len=prefix_seq_len,
                         input_dim=input_dim, hidden_dim=hidden_dim,
                         n_layer=n_layer, n_embd=n_embd)

    # One-time parameter prep (padding + bf16 cast) — NOT per forward.
    prepped, meta = prepare_params(params, n_layer=n_layer, n_embd=n_embd)

    fwd = functools.partial(prefix_encoder_forward, n_layer=n_layer,
                            n_head=n_head, n_embd=n_embd)
    out = fwd(prepped, meta, batch_size)
    out = jax.block_until_ready(out)

    # Reference check in plain JAX (f32; kernel uses bf16 matmul inputs).
    emb = params["prefix_wte"]
    h_ref = jnp.tanh(emb @ params["w1"] + params["b1"])
    pkv_ref = h_ref @ params["w2"] + params["b2"]
    pkv_ref = jnp.broadcast_to(pkv_ref[None], (batch_size,) + pkv_ref.shape)
    pkv_ref = pkv_ref.reshape(batch_size, prefix_seq_len, n_layer * 2, n_head,
                              n_embd // n_head)
    pkv_ref = jnp.transpose(pkv_ref, (2, 0, 3, 1, 4))
    ref = tuple(pkv_ref[2 * i:2 * i + 2] for i in range(n_layer))

    assert len(out) == n_layer
    for o, r in zip(out, ref):
        assert o.shape == (2, batch_size, n_head, prefix_seq_len,
                           n_embd // n_head), o.shape
        assert jnp.allclose(o, r, atol=1e-2), "mismatch vs reference"

    print("KERNEL_OK")
</pallas_src>

<mosaic_0001>
module attributes {stable_mosaic.version = 11 : i64} {
  func.func @_layer1_kernel(%arg0: i32, %arg1: memref<8x128xbf16, #tpu.memory_space<vmem>>, %arg2: memref<128x128xbf16, #tpu.memory_space<vmem>>, %arg3: memref<1x128xf32, #tpu.memory_space<vmem>>, %arg4: memref<8x128xbf16, #tpu.memory_space<vmem>>) attributes {dimension_semantics = [#tpu.dimension_semantics<arbitrary>], iteration_bounds = array<i64: 1>, scalar_prefetch = 0 : i64, scratch_operands = 0 : i64, tpu.core_type = #tpu.core_type<tc>, window_params = [{pipeline_mode = #tpu.pipeline_mode<synchronous>, transform_indices = @transform_0, window_bounds = array<i64: 8, 128>}, {pipeline_mode = #tpu.pipeline_mode<synchronous>, transform_indices = @transform_1, window_bounds = array<i64: 128, 128>}, {pipeline_mode = #tpu.pipeline_mode<synchronous>, transform_indices = @transform_2, window_bounds = array<i64: 1, 128>}, {pipeline_mode = #tpu.pipeline_mode<synchronous>, transform_indices = @transform_3, window_bounds = array<i64: 8, 128>}]} {
    %c0 = arith.constant 0 : index
    %c0_0 = arith.constant 0 : index
    %0 = vector.load %arg1[%c0, %c0_0] : memref<8x128xbf16, #tpu.memory_space<vmem>>, vector<8x128xbf16>
    %c0_1 = arith.constant 0 : index
    %c0_2 = arith.constant 0 : index
    %1 = vector.load %arg2[%c0_1, %c0_2] : memref<128x128xbf16, #tpu.memory_space<vmem>>, vector<128x128xbf16>
    %cst = arith.constant dense<0.000000e+00> : vector<8x128xf32>
    %2 = tpu.matmul %0, %1, %cst {dimension_numbers = #tpu.dot_dimension_numbers<[1], [0], [0], [1], [0, 0, 1, 1], [], []>} : vector<8x128xbf16>, vector<128x128xbf16>, vector<8x128xf32> -> vector<8x128xf32>
    %c0_3 = arith.constant 0 : index
    %c0_4 = arith.constant 0 : index
    %3 = vector.load %arg3[%c0_3, %c0_4] : memref<1x128xf32, #tpu.memory_space<vmem>>, vector<1x128xf32>
    %4 = vector.broadcast %3 : vector<1x128xf32> to vector<8x128xf32>
    %5 = arith.addf %2, %4 : vector<8x128xf32>
    %6 = math.tanh %5 : vector<8x128xf32>
    %7 = arith.truncf %6 : vector<8x128xf32> to vector<8x128xbf16>
    %c0_5 = arith.constant 0 : index
    %c0_6 = arith.constant 0 : index
    %8 = vector.load %arg4[%c0_5, %c0_6] : memref<8x128xbf16, #tpu.memory_space<vmem>>, vector<8x128xbf16>
    tpu.vector_store %arg4[%c0_5, %c0_6], %7 {strides = array<i32>} : memref<8x128xbf16, #tpu.memory_space<vmem>>, vector<8x128xbf16>,
    return
  }
  func.func @transform_0(%arg0: i32) -> (i32, i32) {
    %c0_i32 = arith.constant 0 : i32
    %c0_i32_0 = arith.constant 0 : i32
    %c0_i32_1 = arith.constant 0 : i32
    return %c0_i32, %c0_i32_0 : i32, i32
  }
  func.func @transform_1(%arg0: i32) -> (i32, i32) {
    %c0_i32 = arith.constant 0 : i32
    %c0_i32_0 = arith.constant 0 : i32
    %c0_i32_1 = arith.constant 0 : i32
    return %c0_i32, %c0_i32_0 : i32, i32
  }
  func.func @transform_2(%arg0: i32) -> (i32, i32) {
    %c0_i32 = arith.constant 0 : i32
    %c0_i32_0 = arith.constant 0 : i32
    %c0_i32_1 = arith.constant 0 : i32
    return %c0_i32, %c0_i32_0 : i32, i32
  }
  func.func @transform_3(%arg0: i32) -> (i32, i32) {
    %c0_i32 = arith.constant 0 : i32
    %c0_i32_0 = arith.constant 0 : i32
    %c0_i32_1 = arith.constant 0 : i32
    return %c0_i32, %c0_i32_0 : i32, i32
  }
}

</mosaic_0001>

<bundles_post_ra>
// kernel: tpu_custom_call.1
= control target key start
LH: loop header
LB: loop body
LE: loop exit
PB: predicated region body
PF: predicated region fallthrough
CT: control target
= control target key end

     0   :  { %8 = vsyncpa [#allocation3], 0  ;;  %s373_s0 = inlined_call_operand.hbm [shape: bf16[8,128], index: 0, kind: input, shape index: {}]   ;;  %s374_s1 = inlined_call_operand.hbm [shape: bf16[128,128], index: 1, kind: input, shape index: {}]   ;;  %s375_s2 = inlined_call_operand.vmem [shape: f32[1,128], index: 2, kind: input, shape index: {}]   ;;  %s376_s3 = inlined_call_operand.hbm [shape: bf16[8,128], index: 3, kind: output, shape index: {}]  }
   0x1   :  { %9 = vsyncpa [#allocation6], 0 }
   0x2   :  { %10 = vsyncpa [#allocation4], 0  ;;  %s300_s12 = smov [#allocation2]   ;;  %s301_s14 = smov [#allocation5]  }
   0x3   :  { %s17_s13 = sshll.u32 %s300_s12, 4  ;;  %s26_s15 = sshll.u32 %s301_s14, 4  ;;  %s18_s13 = int_to_ptr.vmem [resolvable:$true] %s17_s13  ;;  %s327_s15 = int_to_ptr.vmem [resolvable:$true] %s26_s15 }
   0x4   :  { %s228_s18 = scalar_lea.hbm %s373_s0, 64 }
   0x5   :  { %p229_p0 = scmp.ne.s32.totalorder %s373_s0, %s228_s18  ;;  %p232_p1 = scmp.lt.u32.totalorder %s228_s18, %s373_s0 }
   0x7   :  { %p234_p2 = pnand %p232_p1, %p229_p0 }
   0x9   :  { %237 = shalt.err (!%p234_p2)
}
   0xa   :  { %s238_s23 = scalar_lea.vmem %s18_s13, 64  ;;  %p243_p4 = scmp.lt.s32.totalorder %s18_s13, %s18_s13 }
   0xb   :  { %p239_p3 = scmp.ne.s32.totalorder %s18_s13, %s238_s23  ;;  %p244_p5 = scmp.lt.s32.totalorder %s238_s23, %s238_s23 }
   0xd   :  { %p245_p6 = por %p244_p5, %p243_p4 }
   0xf   :  { %p246_p7 = pnand %p245_p6, %p239_p3 }
  0x11   :  { %249 = shalt.err (!%p246_p7)
}
  0x12   :  { %20 = dma.hbm_to_vmem [thread:$0]  %s373_s0, 64, %s18_s13, [#allocation3]  }
  0x13   :  { %s250_s28 = scalar_lea.hbm %s374_s1, 1024 }
  0x14   :  { %p251_p8 = scmp.ne.s32.totalorder %s374_s1, %s250_s28  ;;  %p254_p9 = scmp.lt.u32.totalorder %s250_s28, %s374_s1 }
  0x16   :  { %p256_p10 = pnand %p254_p9, %p251_p8 }
  0x18   :  { %259 = shalt.err (!%p256_p10)
}
  0x19   :  { %s260_s6 = scalar_lea.vmem %s327_s15, 1024  ;;  %p265_p12 = scmp.lt.s32.totalorder %s327_s15, %s327_s15 }
  0x1a   :  { %p261_p11 = scmp.ne.s32.totalorder %s327_s15, %s260_s6  ;;  %p266_p13 = scmp.lt.s32.totalorder %s260_s6, %s260_s6 }
  0x1c   :  { %p267_p0 = por %p266_p13, %p265_p12 }
  0x1e   :  { %p268_p1 = pnand %p267_p0, %p261_p11 }
  0x20   :  { %271 = shalt.err (!%p268_p1)
}
  0x21   :  { %s302_s0 = smov 64   ;;  %s303_s7 = smov 4  }
  0x22   :  { %32 = dma.hbm_to_vmem [thread:$0]  %s374_s1, 1024, %s327_s15, [#allocation6], %s302_s0, %s302_s0, %s303_s7  }
  0x23   :  { %294 = dma.done.wait [#allocation3], 64  }
  0x24   :  { %295 = vsyncadd [#allocation3], 4294967232 }
  0x25   :  { %296 = dma.done.wait [#allocation6], 1024  }
  0x26   :  { %297 = vsyncadd [#allocation6], 4294966272  ;;  %v304_v0 = vmov 0.0   ;;  %vm305_vm0 = vmmov 0   ;;  %v218_v1 = vld [vmem:[#allocation5] sm:$0xff]   ;;  %v219_v2 = vld [vmem:[#allocation5 + $0x8] sm:$0xff]  }
  0x27   :  { %191 = vmatprep.subr.bf16.mxu0 %v304_v0  ;;  %207 = vmatprep.mubr.msk.bf16.mxu0 %vm305_vm0, %v304_v0  ;;  %v220_v3 = vld [vmem:[#allocation5 + $0x10] sm:$0xff]   ;;  %v221_v4 = vld [vmem:[#allocation5 + $0x18] sm:$0xff]   ;;  %v222_v5 = vld [vmem:[#allocation5 + $0x20] sm:$0xff]   ;;  %s306_s11 = smov [#allocation7]  }
  0x28   :  { %192 = vmatpush3.bf16.msra.mxu0 %v218_v1  ;;  %v223_v6 = vld [vmem:[#allocation5 + $0x28] sm:$0xff]   ;;  %v224_v7 = vld [vmem:[#allocation5 + $0x30] sm:$0xff]   ;;  %v225_v8 = vld [vmem:[#allocation5 + $0x38] sm:$0xff]   ;;  %s163_s12 = sshll.u32 %s306_s11, 4  ;;  %s164_s12 = int_to_ptr.vmem [resolvable:$true] %s163_s12 }
  0x29   :  { %193 = vmatprep.subr.bf16.mxu0 %v304_v0  ;;  %v42_v9 = vld [vmem:[#allocation2] sm:$0xf]  ;;  %s272_s13 = scalar_lea.vmem %s164_s12, 64  ;;  %p277_p3 = scmp.lt.s32.totalorder %s164_s12, %s164_s12 }
  0x2a   :  { %v173_v10 = vld [vmem:[%s375_s2] ss:$0 sm:$0xff]  ;;  %p273_p2 = scmp.ne.s32.totalorder %s164_s12, %s272_s13  ;;  %p278_p4 = scmp.lt.s32.totalorder %s272_s13, %s272_s13 }
  0x2c   :  { %194 = vmatpush3.bf16.msra.mxu0 %v219_v2  ;;  %p279_p5 = por %p278_p4, %p277_p3 }
  0x2d   :  { %195 = vmatprep.subr.bf16.mxu0 %v304_v0 }
  0x2e   :  { %p280_p6 = pnand %p279_p5, %p273_p2 }
  0x30   :  { %196 = vmatpush3.bf16.msra.mxu0 %v220_v3 }
  0x31   :  { %197 = vmatprep.subr.bf16.mxu0 %v304_v0 }
  0x34   :  { %198 = vmatpush3.bf16.msra.mxu0 %v221_v4 }
  0x35   :  { %199 = vmatprep.subr.bf16.mxu0 %v304_v0 }
  0x38   :  { %200 = vmatpush3.bf16.msra.mxu0 %v222_v5 }
  0x39   :  { %201 = vmatprep.subr.bf16.mxu0 %v304_v0 }
  0x3c   :  { %202 = vmatpush3.bf16.msra.mxu0 %v223_v6 }
  0x3d   :  { %203 = vmatprep.subr.bf16.mxu0 %v304_v0 }
  0x40   :  { %204 = vmatpush3.bf16.msra.mxu0 %v224_v7 }
  0x41   :  { %205 = vmatprep.subr.bf16.mxu0 %v304_v0 }
  0x44   :  { %206 = vmatpush3.bf16.msra.mxu0 %v225_v8 }
  0x47   :  { %208 = vmatmul.mubr.bf16.vlgmr.msra.gmra.mrb[0].mxu0 %v42_v9 }
 0x11a   :  { %v148_v11 = vpop.f32.mrb[0].mxu0 }
 0x11b   :  { %v149_v12 = vadd.f32 %v173_v10, %v148_v11  ;;  %v209_v13 = vpop.f32.mrb[1].mxu0 }
 0x11c   :  { %v151_v14 = vpop.f32.mrb[2].mxu0 }
 0x11d   :  { %226 = vtanh.f32 %v149_v12  ;;  %v210_v15 = vpop.f32.mrb[3].mxu0 }
 0x127   :  { %v227_v16 = vpop.eup %226 }
 0x128   :  { %v155_v17 = vpack.c.bf16 %v227_v16, %v227_v16 }
 0x12a   :  { %156 = vst [vmem:[#allocation7] sm:$0xf] %v155_v17 }
 0x12b   :  { %283 = shalt.err (!%p280_p6)
}
 0x12c   :  { %s284_s15 = scalar_lea.hbm %s376_s3, 64 }
 0x12d   :  { %p285_p7 = scmp.ne.s32.totalorder %s376_s3, %s284_s15  ;;  %p288_p8 = scmp.lt.u32.totalorder %s284_s15, %s376_s3 }
 0x12f   :  { %p290_p9 = pnand %p288_p8, %p285_p7 }
 0x131   :  { %293 = shalt.err (!%p290_p9)
}
 0x132   :  { %166 = dma.vmem_to_hbm [thread:$0]  %s164_s12, 64, %s376_s3, [#allocation4]  }
 0x133   :  { %298 = dma.done.wait [#allocation4], 64  }
 0x134   :  { %299 = vsyncadd [#allocation4], 4294967232 }
 0x135   :  { %170 = vsyncpa [#allocation3], 1 }
 0x136   :  { %171 = vsyncpa [#allocation6], 1 }
 0x137   :  { %172 = vsyncpa [#allocation4], 1 }

</bundles_post_ra>
